<compile_context>
chip_gen: v7x
topology: tpu7x:2x2x1
jax: 0.10.0
libtpu: 0.0.40
codegen_flags: <defaults>
</compile_context>

<pallas_src>
import functools
import math

import jax
import jax.numpy as jnp
from jax.experimental import pallas as pl
from jax.experimental.pallas import tpu as pltpu


# ---------------------------------------------------------------------------
# Tiling / padding helpers
# ---------------------------------------------------------------------------

def _round_up(x, m):
    return ((x + m - 1) // m) * m


def _pick_tile(dim, target, align):
    """Tile for a matmul dim: full dim if it already fits `target` (full-dim blocks are
    always legal), else an align-multiple tile of size ~target; caller pads the dim."""
    if dim <= target:
        return dim
    return max(align, (target // align) * align)


def _divisor_tile(dim, target, align):
    """Largest divisor of `dim` that is a multiple of `align` and <= target."""
    if dim <= target:
        return dim
    t = (target // align) * align
    while t >= align:
        if dim % t == 0:
            return t
        t -= align
    # TODO(synk): irregular dims fall back to a full-dim tile (only used for the
    # attention query axis; typical context lengths are multiples of 128).
    return dim


def _pad2d(a, rows, cols):
    r, c = a.shape
    if r == rows and c == cols:
        return a
    return jnp.pad(a, ((0, rows - r), (0, cols - c)))


@functools.lru_cache(maxsize=None)
def _vmem_limit():
    """Per-generation scoped-VMEM budget: ~3/4 of physical VMEM, capped at 96 MiB.
    (v5e/v6e: 128 MiB physical -> 96 MiB; v7x: 64 MiB physical -> 48 MiB.)"""
    try:
        cap = int(getattr(pltpu.get_tpu_info(), "vmem_capacity_bytes", 0) or 0)
        if cap > 0:
            return max(32 * 1024 * 1024, min((cap * 3) // 4, 96 * 1024 * 1024))
    except Exception:
        pass
    return 48 * 1024 * 1024


# ---------------------------------------------------------------------------
# Kernels
# ---------------------------------------------------------------------------

def _ln_matmul_kernel(x_ref, g_ref, b_ref, w_ref, bias_ref, o_ref, xn_ref, *,
                      eps, activation):
    # Fused: (LayerNorm(x) * g + b) @ W + bias [+ GELU].
    # LayerNorm of the (tm, K) x tile is computed once (j == 0) into a VMEM scratch in
    # the MXU operand dtype and reused for every N tile (x block index is j-invariant).
    @pl.when(pl.program_id(1) == 0)
    def _():
        x = x_ref[...].astype(jnp.float32)
        mean = jnp.mean(x, axis=-1, keepdims=True)
        var = jnp.mean(jnp.square(x - mean), axis=-1, keepdims=True)
        xn = (x - mean) * jax.lax.rsqrt(var + eps)
        xn = xn * g_ref[...].astype(jnp.float32) + b_ref[...].astype(jnp.float32)
        xn_ref[...] = xn.astype(xn_ref.dtype)

    acc = jnp.dot(xn_ref[...], w_ref[...], preferred_element_type=jnp.float32)
    acc = acc + bias_ref[...].astype(jnp.float32)
    if activation == "gelu":
        acc = jax.nn.gelu(acc, approximate=True)  # GPT-2 "new" (tanh) GELU
    o_ref[...] = acc.astype(o_ref.dtype)


def _matmul_kernel(x_ref, w_ref, bias_ref, *rest, has_residual, activation):
    # K-tiled matmul, bf16 MXU operands, fp32 accumulator; bias [+ GELU] [+ residual]
    # fused in the epilogue.
    if has_residual:
        res_ref, o_ref, acc_ref = rest
    else:
        res_ref = None
        o_ref, acc_ref = rest

    k = pl.program_id(2)

    @pl.when(k == 0)
    def _():
        acc_ref[...] = jnp.zeros_like(acc_ref)

    acc_ref[...] += jnp.dot(x_ref[...].astype(w_ref.dtype), w_ref[...],
                            preferred_element_type=jnp.float32)

    @pl.when(k == pl.num_programs(2) - 1)
    def _():
        out = acc_ref[...] + bias_ref[...].astype(jnp.float32)
        if activation == "gelu":
            out = jax.nn.gelu(out, approximate=True)
        if res_ref is not None:
            out = out + res_ref[...].astype(jnp.float32)
        o_ref[...] = out.astype(o_ref.dtype)


def _attention_kernel(q_ref, kt_ref, v_ref, o_ref, w_ref, *, scale, q_tile):
    # One (batch, head, query-tile) per grid step.
    #   q_ref:(1,1,tq,Dh)  kt_ref:(1,1,Dh,T)  v_ref:(1,1,T,Dh)
    #   o_ref:(1,1,tq,Dh)  w_ref:(1,1,tq,T)
    qi = pl.program_id(2)

    # Fold 1/sqrt(Dh) into q (tq*Dh multiplies instead of tq*T).
    q = (q_ref[0, 0].astype(jnp.float32) * scale).astype(kt_ref.dtype)
    s = jnp.dot(q, kt_ref[0, 0], preferred_element_type=jnp.float32)      # (tq, T) fp32

    row = qi * q_tile + jax.lax.broadcasted_iota(jnp.int32, s.shape, 0)
    col = jax.lax.broadcasted_iota(jnp.int32, s.shape, 1)
    s = jnp.where(col <= row, s, jnp.float32(-1e30))                      # fp32 mask

    m = jnp.max(s, axis=-1, keepdims=True)
    p = jnp.exp(s - m)
    p = p * pl.reciprocal(jnp.sum(p, axis=-1, keepdims=True), approx=True)  # EUP rcp

    w_ref[0, 0] = p.astype(w_ref.dtype)
    o_ref[0, 0] = jnp.dot(p.astype(v_ref.dtype), v_ref[0, 0],
                          preferred_element_type=jnp.float32).astype(o_ref.dtype)


# ---------------------------------------------------------------------------
# Pallas-call wrappers
# ---------------------------------------------------------------------------

def ln_matmul(x, gamma, beta, w, bias, activation=None, eps=1e-5, out_dtype=None,
              tm_target=256, tn_target=256):
    """LayerNorm fused into the prologue of x @ W + b (optionally + GELU)."""
    M, K = x.shape
    Kw, N = w.shape
    assert K == Kw
    out_dtype = out_dtype or x.dtype
    tm = _pick_tile(M, tm_target, 8)        # K stays whole: needed by the LN reduction
    tn = _pick_tile(N, tn_target, 128)
    Mp, Np = _round_up(M, tm), _round_up(N, tn)

    xp = _pad2d(x, Mp, K)
    wp = _pad2d(w, K, Np)
    bp = _pad2d(bias.reshape(1, N), 1, Np)

    kernel = functools.partial(_ln_matmul_kernel, eps=eps, activation=activation)
    out = pl.pallas_call(
        kernel,
        grid=(Mp // tm, Np // tn),
        in_specs=[
            pl.BlockSpec((tm, K), lambda i, j: (i, 0)),
            pl.BlockSpec((1, K), lambda i, j: (0, 0)),
            pl.BlockSpec((1, K), lambda i, j: (0, 0)),
            pl.BlockSpec((K, tn), lambda i, j: (0, j)),
            pl.BlockSpec((1, tn), lambda i, j: (0, j)),
        ],
        out_specs=pl.BlockSpec((tm, tn), lambda i, j: (i, j)),
        out_shape=jax.ShapeDtypeStruct((Mp, Np), out_dtype),
        scratch_shapes=[pltpu.VMEM((tm, K), w.dtype)],   # normalized-x reuse buffer
        compiler_params=pltpu.CompilerParams(
            # N axis sequential: the xn scratch written at j == 0 is reused for j > 0.
            dimension_semantics=("parallel", "arbitrary"),
            vmem_limit_bytes=_vmem_limit()),
    )(xp, gamma.reshape(1, K), beta.reshape(1, K), wp, bp)
    if (Mp, Np) != (M, N):
        out = out[:M, :N]
    return out


def matmul_bias(x, w, bias, residual=None, activation=None, out_dtype=None,
                tm_target=256, tn_target=256, tk_target=512):
    """Tiled x @ W + b with fp32 accumulator; optional GELU / residual in epilogue."""
    M, K = x.shape
    Kw, N = w.shape
    assert K == Kw
    out_dtype = out_dtype or x.dtype
    tm = _pick_tile(M, tm_target, 8)
    tn = _pick_tile(N, tn_target, 128)
    tk = _pick_tile(K, tk_target, 128)
    Mp, Np, Kp = _round_up(M, tm), _round_up(N, tn), _round_up(K, tk)

    xp = _pad2d(x, Mp, Kp)
    wp = _pad2d(w, Kp, Np)
    bp = _pad2d(bias.reshape(1, N), 1, Np)

    has_res = residual is not None
    in_specs = [
        pl.BlockSpec((tm, tk), lambda i, j, k: (i, k)),
        pl.BlockSpec((tk, tn), lambda i, j, k: (k, j)),
        pl.BlockSpec((1, tn), lambda i, j, k: (0, j)),
    ]
    operands = [xp, wp, bp]
    if has_res:
        in_specs.append(pl.BlockSpec((tm, tn), lambda i, j, k: (i, j)))
        operands.append(_pad2d(residual, Mp, Np))

    kernel = functools.partial(_matmul_kernel, has_residual=has_res, activation=activation)
    out = pl.pallas_call(
        kernel,
        grid=(Mp // tm, Np // tn, Kp // tk),
        in_specs=in_specs,
        out_specs=pl.BlockSpec((tm, tn), lambda i, j, k: (i, j)),
        out_shape=jax.ShapeDtypeStruct((Mp, Np), out_dtype),
        scratch_shapes=[pltpu.VMEM((tm, tn), jnp.float32)],
        compiler_params=pltpu.CompilerParams(
            dimension_semantics=("parallel", "parallel", "arbitrary"),
            vmem_limit_bytes=_vmem_limit()),
    )(*operands)
    if (Mp, Np) != (M, N):
        out = out[:M, :N]
    return out


def causal_attention(q, k_t, v, *, weights_dtype=jnp.float32, tq_target=256):
    """q:(B,H,T,Dh), k_t:(B,H,Dh,T), v:(B,H,T,Dh) -> (context (B,H,T,Dh), weights (B,H,T,T))."""
    B, H, T, Dh = q.shape
    tq = _divisor_tile(T, tq_target, 8)
    scale = 1.0 / math.sqrt(Dh)
    kernel = functools.partial(_attention_kernel, scale=scale, q_tile=tq)
    ctx, weights = pl.pallas_call(
        kernel,
        grid=(B, H, T // tq),
        in_specs=[
            pl.BlockSpec((1, 1, tq, Dh), lambda b, h, qi: (b, h, qi, 0)),   # Q rows
            pl.BlockSpec((1, 1, Dh, T), lambda b, h, qi: (b, h, 0, 0)),     # K^T (all keys)
            pl.BlockSpec((1, 1, T, Dh), lambda b, h, qi: (b, h, 0, 0)),     # V   (all keys)
        ],
        out_specs=[
            pl.BlockSpec((1, 1, tq, Dh), lambda b, h, qi: (b, h, qi, 0)),   # context
            pl.BlockSpec((1, 1, tq, T), lambda b, h, qi: (b, h, qi, 0)),    # attn weights
        ],
        out_shape=(
            jax.ShapeDtypeStruct((B, H, T, Dh), q.dtype),
            jax.ShapeDtypeStruct((B, H, T, T), weights_dtype),
        ),
        compiler_params=pltpu.CompilerParams(
            dimension_semantics=("parallel", "parallel", "parallel"),
            vmem_limit_bytes=_vmem_limit()),
    )(q, k_t, v)
    return ctx, weights


# ---------------------------------------------------------------------------
# Full decoder-block forward
# ---------------------------------------------------------------------------

def transformer_decoder_block(inputs, params, n_heads, with_residuals=False,
                              weights_dtype=jnp.float32):
    """inputs: (B, T, D).  Returns (output (B,T,D), attn_weights (B,H,T,T))."""
    B, T, D = inputs.shape
    assert D % n_heads == 0
    Dh = D // n_heads
    x2d = inputs.reshape(B * T, D)
    cdt = params["w_qkv"].dtype     # MXU operand / intermediate-activation dtype (bf16)

    # LN1 fused into the QKV projection (bf16 operands, fp32 accumulate).
    qkv = ln_matmul(x2d, params["ln1_g"], params["ln1_b"],
                    params["w_qkv"], params["b_qkv"], out_dtype=cdt)        # (B*T, 3D)

    # Head-separated layouts (cheap XLA transposes of a bf16 activation, tiny next to
    # the (B,H,T,T) attention-weights writeback) so the kernel gets static lane-dense
    # per-head blocks and K arrives pre-transposed (no per-head XLU transpose).
    qkv = qkv.reshape(B, T, 3, n_heads, Dh)
    q = jnp.transpose(qkv[:, :, 0], (0, 2, 1, 3))      # (B, H, T, Dh)
    k_t = jnp.transpose(qkv[:, :, 1], (0, 2, 3, 1))    # (B, H, Dh, T)
    v = jnp.transpose(qkv[:, :, 2], (0, 2, 1, 3))      # (B, H, T, Dh)

    ctx, attn_w = causal_attention(q, k_t, v, weights_dtype=weights_dtype)
    ctx2d = jnp.transpose(ctx, (0, 2, 1, 3)).reshape(B * T, D)              # (B*T, D)

    if with_residuals:
        # x = inputs + dropout1(attn_proj): residual fused into out-proj epilogue.
        x = matmul_bias(ctx2d, params["w_proj"], params["b_proj"],
                        residual=x2d, out_dtype=jnp.float32)
        # LN2 fused into fc1, GELU in its epilogue.
        h = ln_matmul(x, params["ln2_g"], params["ln2_b"],
                      params["w_fc1"], params["b_fc1"], activation="gelu", out_dtype=cdt)
        # out = x + dropout2(fc2(h)): residual fused into fc2 epilogue.
        out = matmul_bias(h, params["w_fc2"], params["b_fc2"],
                          residual=x, out_dtype=jnp.float32)
    else:
        x = matmul_bias(ctx2d, params["w_proj"], params["b_proj"],
                        out_dtype=jnp.float32)                              # dropout1 = id
        h = ln_matmul(x, params["ln2_g"], params["ln2_b"],
                      params["w_fc1"], params["b_fc1"], activation="gelu", out_dtype=cdt)
        out = matmul_bias(h, params["w_fc2"], params["b_fc2"],
                          out_dtype=jnp.float32)                            # dropout2 = id

    return out.reshape(B, T, D), attn_w


def init_params(key, embed_size, n_heads, mlp_hidden_size, weight_dtype=jnp.bfloat16):
    ks = jax.random.split(key, 4)
    s = 0.02
    wd = weight_dtype
    return {
        "ln1_g": jnp.ones((embed_size,), jnp.float32),
        "ln1_b": jnp.zeros((embed_size,), jnp.float32),
        "ln2_g": jnp.ones((embed_size,), jnp.float32),
        "ln2_b": jnp.zeros((embed_size,), jnp.float32),
        "w_qkv": (s * jax.random.normal(ks[0], (embed_size, 3 * embed_size), jnp.float32)).astype(wd),
        "b_qkv": jnp.zeros((3 * embed_size,), jnp.float32),
        "w_proj": (s * jax.random.normal(ks[1], (embed_size, embed_size), jnp.float32)).astype(wd),
        "b_proj": jnp.zeros((embed_size,), jnp.float32),
        "w_fc1": (s * jax.random.normal(ks[2], (embed_size, mlp_hidden_size), jnp.float32)).astype(wd),
        "b_fc1": jnp.zeros((mlp_hidden_size,), jnp.float32),
        "w_fc2": (s * jax.random.normal(ks[3], (mlp_hidden_size, embed_size), jnp.float32)).astype(wd),
        "b_fc2": jnp.zeros((embed_size,), jnp.float32),
    }


# ---------------------------------------------------------------------------
# Pure-JAX reference (fp32 math, same bf16-rounded weights) for parity checks
# ---------------------------------------------------------------------------

def _reference_block(inputs, params, n_heads, with_residuals):
    B, T, D = inputs.shape
    H, Dh = n_heads, D // n_heads
    f32 = lambda a: a.astype(jnp.float32)

    def ln(x, g, b, eps=1e-5):
        mu = jnp.mean(x, -1, keepdims=True)
        var = jnp.mean((x - mu) ** 2, -1, keepdims=True)
        return (x - mu) / jnp.sqrt(var + eps) * g + b

    x = ln(inputs, params["ln1_g"], params["ln1_b"])
    qkv = x @ f32(params["w_qkv"]) + params["b_qkv"]
    qh, kh, vh = jnp.split(qkv, 3, axis=-1)
    qh = qh.reshape(B, T, H, Dh).transpose(0, 2, 1, 3)
    kh = kh.reshape(B, T, H, Dh).transpose(0, 2, 1, 3)
    vh = vh.reshape(B, T, H, Dh).transpose(0, 2, 1, 3)
    s = jnp.einsum("bhqd,bhkd->bhqk", qh, kh) / math.sqrt(Dh)
    mask = jnp.tril(jnp.ones((T, T), bool))
    s = jnp.where(mask, s, -jnp.inf)
    w = jax.nn.softmax(s, axis=-1)
    ctx = jnp.einsum("bhqk,bhkd->bhqd", w, vh).transpose(0, 2, 1, 3).reshape(B, T, D)
    attn = ctx @ f32(params["w_proj"]) + params["b_proj"]
    if with_residuals:
        x1 = inputs + attn
        xn = ln(x1, params["ln2_g"], params["ln2_b"])
        h = jax.nn.gelu(xn @ f32(params["w_fc1"]) + params["b_fc1"], approximate=True)
        out = x1 + (h @ f32(params["w_fc2"]) + params["b_fc2"])
    else:
        xn = ln(attn, params["ln2_g"], params["ln2_b"])
        h = jax.nn.gelu(xn @ f32(params["w_fc1"]) + params["b_fc1"], approximate=True)
        out = h @ f32(params["w_fc2"]) + params["b_fc2"]
    return out, w


if __name__ == "__main__":
    B, T, D = 2, 8, 32          # batch, seq, embed_size
    n_heads = 4
    mlp_hidden = 64

    key = jax.random.PRNGKey(0)
    k_in, k_par = jax.random.split(key)
    inputs = jax.random.normal(k_in, (B, T, D), jnp.float32)
    params = init_params(k_par, D, n_heads, mlp_hidden)

    # --- no-residual path -------------------------------------------------
    out, attn_w = transformer_decoder_block(inputs, params, n_heads, with_residuals=False)
    out = jax.block_until_ready(out)
    attn_w = jax.block_until_ready(attn_w)
    assert out.shape == (B, T, D)
    assert attn_w.shape == (B, n_heads, T, T)
    assert bool(jnp.all(jnp.isfinite(out)))
    # attention rows must sum to ~1 (approx-reciprocal softmax denominator)
    assert bool(jnp.allclose(jnp.sum(attn_w, axis=-1), 1.0, atol=5e-3))

    ref_out, ref_w = _reference_block(inputs, params, n_heads, with_residuals=False)
    assert bool(jnp.allclose(out, ref_out, atol=2e-2, rtol=2e-2))
    assert bool(jnp.allclose(attn_w, ref_w, atol=2e-2, rtol=2e-2))

    # --- residual path ----------------------------------------------------
    out_r, attn_w_r = transformer_decoder_block(inputs, params, n_heads, with_residuals=True)
    out_r = jax.block_until_ready(out_r)
    assert out_r.shape == (B, T, D)
    assert bool(jnp.all(jnp.isfinite(out_r)))
    ref_out_r, _ = _reference_block(inputs, params, n_heads, with_residuals=True)
    assert bool(jnp.allclose(out_r, ref_out_r, atol=2e-2, rtol=2e-2))

    print("KERNEL_OK")
</pallas_src>

<mosaic_0001>
module attributes {stable_mosaic.version = 11 : i64} {
  func.func @_ln_matmul_kernel(%arg0: i32, %arg1: i32, %arg2: memref<16x32xf32, #tpu.memory_space<vmem>>, %arg3: memref<1x32xf32, #tpu.memory_space<vmem>>, %arg4: memref<1x32xf32, #tpu.memory_space<vmem>>, %arg5: memref<32x96xbf16, #tpu.memory_space<vmem>>, %arg6: memref<1x96xf32, #tpu.memory_space<vmem>>, %arg7: memref<16x96xbf16, #tpu.memory_space<vmem>>, %arg8: memref<16x32xbf16, #tpu.memory_space<vmem>>) attributes {dimension_semantics = [#tpu.dimension_semantics<parallel>, #tpu.dimension_semantics<arbitrary>], iteration_bounds = array<i64: 1, 1>, scalar_prefetch = 0 : i64, scratch_operands = 1 : i64, tpu.core_type = #tpu.core_type<tc>, window_params = [{transform_indices = @transform_0, window_bounds = array<i64: 16, 32>}, {pipeline_mode = #tpu.pipeline_mode<synchronous>, transform_indices = @transform_1, window_bounds = array<i64: 1, 32>}, {pipeline_mode = #tpu.pipeline_mode<synchronous>, transform_indices = @transform_2, window_bounds = array<i64: 1, 32>}, {transform_indices = @transform_3, window_bounds = array<i64: 32, 96>}, {transform_indices = @transform_4, window_bounds = array<i64: 1, 96>}, {transform_indices = @transform_5, window_bounds = array<i64: 16, 96>}]} {
    %c0_i32 = arith.constant 0 : i32
    %0 = arith.cmpi eq, %arg1, %c0_i32 : i32
    %1 = arith.extui %0 : i1 to i32
    %c0_i32_0 = arith.constant 0 : i32
    %2 = arith.cmpi ne, %1, %c0_i32_0 : i32
    scf.if %2 {
      %c0_8 = arith.constant 0 : index
      %c0_9 = arith.constant 0 : index
      %11 = vector.load %arg2[%c0_8, %c0_9] : memref<16x32xf32, #tpu.memory_space<vmem>>, vector<16x32xf32>
      %cst_10 = arith.constant dense<0.000000e+00> : vector<16xf32>
      %12 = vector.multi_reduction <add>, %11, %cst_10 [1] : vector<16x32xf32> to vector<16xf32>
      %13 = vector.shape_cast %12 : vector<16xf32> to vector<16x1xf32>
      %cst_11 = arith.constant 3.200000e+01 : f32
      %14 = vector.broadcast %cst_11 : f32 to vector<16x1xf32>
      %15 = arith.divf %13, %14 : vector<16x1xf32>
      %16 = vector.broadcast %15 : vector<16x1xf32> to vector<16x32xf32>
      %17 = arith.subf %11, %16 : vector<16x32xf32>
      %18 = arith.mulf %17, %17 : vector<16x32xf32>
      %cst_12 = arith.constant dense<0.000000e+00> : vector<16xf32>
      %19 = vector.multi_reduction <add>, %18, %cst_12 [1] : vector<16x32xf32> to vector<16xf32>
      %20 = vector.shape_cast %19 : vector<16xf32> to vector<16x1xf32>
      %cst_13 = arith.constant 3.200000e+01 : f32
      %21 = vector.broadcast %cst_13 : f32 to vector<16x1xf32>
      %22 = arith.divf %20, %21 : vector<16x1xf32>
      %23 = vector.broadcast %15 : vector<16x1xf32> to vector<16x32xf32>
      %24 = arith.subf %11, %23 : vector<16x32xf32>
      %cst_14 = arith.constant 9.99999974E-6 : f32
      %25 = vector.broadcast %cst_14 : f32 to vector<16x1xf32>
      %26 = arith.addf %22, %25 : vector<16x1xf32>
      %27 = math.rsqrt %26 : vector<16x1xf32>
      %28 = vector.broadcast %27 : vector<16x1xf32> to vector<16x32xf32>
      %29 = arith.mulf %24, %28 : vector<16x32xf32>
      %c0_15 = arith.constant 0 : index
      %c0_16 = arith.constant 0 : index
      %30 = vector.load %arg3[%c0_15, %c0_16] : memref<1x32xf32, #tpu.memory_space<vmem>>, vector<1x32xf32>
      %31 = vector.broadcast %30 : vector<1x32xf32> to vector<16x32xf32>
      %32 = arith.mulf %29, %31 : vector<16x32xf32>
      %c0_17 = arith.constant 0 : index
      %c0_18 = arith.constant 0 : index
      %33 = vector.load %arg4[%c0_17, %c0_18] : memref<1x32xf32, #tpu.memory_space<vmem>>, vector<1x32xf32>
      %34 = vector.broadcast %33 : vector<1x32xf32> to vector<16x32xf32>
      %35 = arith.addf %32, %34 : vector<16x32xf32>
      %36 = arith.truncf %35 : vector<16x32xf32> to vector<16x32xbf16>
      %c0_19 = arith.constant 0 : index
      %c0_20 = arith.constant 0 : index
      %37 = vector.load %arg8[%c0_19, %c0_20] : memref<16x32xbf16, #tpu.memory_space<vmem>>, vector<16x32xbf16>
      tpu.vector_store %arg8[%c0_19, %c0_20], %36 {strides = array<i32>} : memref<16x32xbf16, #tpu.memory_space<vmem>>, vector<16x32xbf16>,
    } else {
    }
    %c0 = arith.constant 0 : index
    %c0_1 = arith.constant 0 : index
    %3 = vector.load %arg8[%c0, %c0_1] : memref<16x32xbf16, #tpu.memory_space<vmem>>, vector<16x32xbf16>
    %c0_2 = arith.constant 0 : index
    %c0_3 = arith.constant 0 : index
    %4 = vector.load %arg5[%c0_2, %c0_3] : memref<32x96xbf16, #tpu.memory_space<vmem>>, vector<32x96xbf16>
    %cst = arith.constant dense<0.000000e+00> : vector<16x96xf32>
    %5 = tpu.matmul %3, %4, %cst {dimension_numbers = #tpu.dot_dimension_numbers<[1], [0], [0], [1], [0, 0, 1, 1], [], []>} : vector<16x32xbf16>, vector<32x96xbf16>, vector<16x96xf32> -> vector<16x96xf32>
    %c0_4 = arith.constant 0 : index
    %c0_5 = arith.constant 0 : index
    %6 = vector.load %arg6[%c0_4, %c0_5] : memref<1x96xf32, #tpu.memory_space<vmem>>, vector<1x96xf32>
    %7 = vector.broadcast %6 : vector<1x96xf32> to vector<16x96xf32>
    %8 = arith.addf %5, %7 : vector<16x96xf32>
    %9 = arith.truncf %8 : vector<16x96xf32> to vector<16x96xbf16>
    %c0_6 = arith.constant 0 : index
    %c0_7 = arith.constant 0 : index
    %10 = vector.load %arg7[%c0_6, %c0_7] : memref<16x96xbf16, #tpu.memory_space<vmem>>, vector<16x96xbf16>
    tpu.vector_store %arg7[%c0_6, %c0_7], %9 {strides = array<i32>} : memref<16x96xbf16, #tpu.memory_space<vmem>>, vector<16x96xbf16>,
    return
  }
  func.func @transform_0(%arg0: i32, %arg1: i32) -> (i32, i32) {
    %c0_i32 = arith.constant 0 : i32
    %c0_i32_0 = arith.constant 0 : i32
    return %arg0, %c0_i32 : i32, i32
  }
  func.func @transform_1(%arg0: i32, %arg1: i32) -> (i32, i32) {
    %c0_i32 = arith.constant 0 : i32
    %c0_i32_0 = arith.constant 0 : i32
    %c0_i32_1 = arith.constant 0 : i32
    return %c0_i32, %c0_i32_0 : i32, i32
  }
  func.func @transform_2(%arg0: i32, %arg1: i32) -> (i32, i32) {
    %c0_i32 = arith.constant 0 : i32
    %c0_i32_0 = arith.constant 0 : i32
    %c0_i32_1 = arith.constant 0 : i32
    return %c0_i32, %c0_i32_0 : i32, i32
  }
  func.func @transform_3(%arg0: i32, %arg1: i32) -> (i32, i32) {
    %c0_i32 = arith.constant 0 : i32
    %c0_i32_0 = arith.constant 0 : i32
    return %c0_i32, %arg1 : i32, i32
  }
  func.func @transform_4(%arg0: i32, %arg1: i32) -> (i32, i32) {
    %c0_i32 = arith.constant 0 : i32
    %c0_i32_0 = arith.constant 0 : i32
    return %c0_i32, %arg1 : i32, i32
  }
  func.func @transform_5(%arg0: i32, %arg1: i32) -> (i32, i32) {
    %c0_i32 = arith.constant 0 : i32
    return %arg0, %arg1 : i32, i32
  }
}

</mosaic_0001>

<bundles_post_ra>
// kernel: tpu_custom_call.1
= control target key start
LH: loop header
LB: loop body
LE: loop exit
PB: predicated region body
PF: predicated region fallthrough
CT: control target
= control target key end

     0   :  { %10 = vsyncpa [#allocation4], 0  ;;  %s406_s0 = inlined_call_operand.hbm [shape: f32[16,32], index: 0, kind: input, shape index: {}]   ;;  %s407_s1 = inlined_call_operand.vmem [shape: f32[1,32], index: 1, kind: input, shape index: {}]   ;;  %s408_s2 = inlined_call_operand.vmem [shape: f32[1,32], index: 2, kind: input, shape index: {}]   ;;  %s409_s3 = inlined_call_operand.hbm [shape: bf16[32,96], index: 3, kind: input, shape index: {}]   ;;  %s410_s4 = inlined_call_operand.vmem [shape: f32[1,96], index: 4, kind: input, shape index: {}]   ;;  %s411_s5 = inlined_call_operand.hbm [shape: bf16[16,96], index: 5, kind: output, shape index: {}]  }
   0x1   :  { %11 = vsyncpa [#allocation7], 0 }
   0x2   :  { %12 = vsyncpa [#allocation5], 0  ;;  %s310_s18 = smov [#allocation3]   ;;  %s238_s22 = scalar_lea.hbm %s406_s0, 256 }
   0x3   :  { %s18_s19 = sshll.u32 %s310_s18, 4  ;;  %p239_p0 = scmp.ne.s32.totalorder %s406_s0, %s238_s22  ;;  %s19_s19 = int_to_ptr.vmem [resolvable:$true] %s18_s19 }
   0x4   :  { %p242_p1 = scmp.lt.u32.totalorder %s238_s22, %s406_s0 }
   0x6   :  { %p244_p2 = pnand %p242_p1, %p239_p0 }
   0x8   :  { %247 = shalt.err (!%p244_p2)
}
   0x9   :  { %s248_s27 = scalar_lea.vmem %s19_s19, 256  ;;  %p253_p4 = scmp.lt.s32.totalorder %s19_s19, %s19_s19 }
   0xa   :  { %p249_p3 = scmp.ne.s32.totalorder %s19_s19, %s248_s27  ;;  %p254_p5 = scmp.lt.s32.totalorder %s248_s27, %s248_s27 }
   0xc   :  { %p255_p6 = por %p254_p5, %p253_p4 }
   0xe   :  { %p256_p7 = pnand %p255_p6, %p249_p3 }
  0x10   :  { %259 = shalt.err (!%p256_p7)
}
  0x11   :  { %s311_s28 = smov 128   ;;  %s312_s29 = smov 8  }
  0x12   :  { %24 = dma.hbm_to_vmem [thread:$0]  %s406_s0, 256, %s19_s19, [#allocation4], %s311_s28, %s311_s28, %s312_s29  }
  0x13   :  { %s313_s7 = smov [#allocation6]   ;;  %s260_s11 = scalar_lea.hbm %s409_s3, 256 }
  0x14   :  { %s34_s8 = sshll.u32 %s313_s7, 4  ;;  %p261_p8 = scmp.ne.s32.totalorder %s409_s3, %s260_s11  ;;  %s35_s8 = int_to_ptr.vmem [resolvable:$true] %s34_s8 }
  0x15   :  { %p264_p9 = scmp.lt.u32.totalorder %s260_s11, %s409_s3 }
  0x17   :  { %p266_p10 = pnand %p264_p9, %p261_p8 }
  0x19   :  { %269 = shalt.err (!%p266_p10)
}
  0x1a   :  { %s270_s16 = scalar_lea.vmem %s35_s8, 256  ;;  %p275_p12 = scmp.lt.s32.totalorder %s35_s8, %s35_s8 }
  0x1b   :  { %p271_p11 = scmp.ne.s32.totalorder %s35_s8, %s270_s16  ;;  %p276_p13 = scmp.lt.s32.totalorder %s270_s16, %s270_s16 }
  0x1d   :  { %p277_p0 = por %p276_p13, %p275_p12 }
  0x1f   :  { %p278_p1 = pnand %p277_p0, %p271_p11 }
  0x21   :  { %281 = shalt.err (!%p278_p1)
}
  0x22   :  { %s314_s0 = smov 64   ;;  %s315_s17 = smov 4  }
  0x23   :  { %40 = dma.hbm_to_vmem [thread:$0]  %s409_s3, 256, %s35_s8, [#allocation7], %s314_s0, %s314_s0, %s315_s17  }
  0x24   :  { %304 = dma.done.wait [#allocation4], 256  }
  0x25   :  { %305 = vsyncadd [#allocation4], 4294967040 }
  0x26   :  { %306 = dma.done.wait [#allocation7], 256  }
  0x27   :  { %307 = vsyncadd [#allocation7], 4294967040  ;;  %vm56_vm0 = vcmask 261120   ;;  %v54_v0 = vld [vmem:[#allocation3] sm:$0xff]  ;;  %v55_v1 = vld [vmem:[#allocation3 + $0x8] sm:$0xff]  ;;  %v316_v15 = vmov 0.0  }
  0x28   :  { %v57_v2 = vsel %vm56_vm0, %v54_v0, 0.0  ;;  %v60_v3 = vsel %vm56_vm0, %v55_v1, 0.0  ;;  %v232_v14 = vld [vmem:[#allocation6] sm:$0xff]   ;;  %215 = vmatprep.subr.bf16.mxu0 %v316_v15  ;;  %v233_v16 = vld [vmem:[#allocation6 + $0x8] sm:$0xff]   ;;  %vm317_vm1 = vmmov 0   ;;  %vm181_vm2 = vcmask 781312  }
  0x29   :  { %58 = vadd.xlane.f32.xlu0 %v57_v2  ;;  %216 = vmatpush3.bf16.msra.mxu0 %v232_v14  ;;  %v202_v25 = vld [vmem:[%s407_s1] ss:$0 sm:$0xff]  ;;  %s318_s1 = smov [#allocation8]  }
  0x2a   :  { %219 = vmatprep.mubr.msk.bf16.mxu0 %vm317_vm1, %v316_v15  ;;  %217 = vmatprep.subr.bf16.mxu0 %v316_v15  ;;  %v203_v29 = vld [vmem:[%s408_s2] ss:$0 sm:$0xff]  ;;  %s189_s2 = sshll.u32 %s318_s1, 4  ;;  %s190_s2 = int_to_ptr.vmem [resolvable:$true] %s189_s2 }
  0x2b   :  { %v204_v35 = vld [vmem:[%s410_s4] ss:$0 sm:$0xff]  ;;  %s282_s25 = scalar_lea.vmem %s190_s2, 128  ;;  %p287_p3 = scmp.lt.s32.totalorder %s190_s2, %s190_s2 }
  0x2c   :  { %p283_p2 = scmp.ne.s32.totalorder %s190_s2, %s282_s25  ;;  %p288_p4 = scmp.lt.s32.totalorder %s282_s25, %s282_s25 }
  0x2d   :  { %61 = vadd.xlane.f32.xlu0 %v60_v3  ;;  %218 = vmatpush3.bf16.msra.mxu0 %v233_v16 }
  0x2e   :  { %p289_p5 = por %p288_p4, %p287_p3 }
  0x30   :  { %p290_p6 = pnand %p289_p5, %p283_p2 }
  0xb6   :  { %v59_v4 = vpop.xlane.xlu0 %58 }
  0xb7   :  { %v64_v5 = vmul.f32 0.03125, %v59_v4 }
  0xb9   :  { %v66_v6 = vsub.f32 %v54_v0, %v64_v5 }
  0xba   :  { %v62_v7 = vpop.xlane.xlu0 %61 }
  0xbb   :  { %v65_v8 = vmul.f32 0.03125, %v62_v7  ;;  %v68_v9 = vmul.f32 %v66_v6, %v66_v6 }
  0xbd   :  { %v67_v10 = vsub.f32 %v55_v1, %v65_v8  ;;  %v70_v11 = vsel %vm56_vm0, %v68_v9, 0.0 }
  0xbe   :  { %71 = vadd.xlane.f32.xlu1 %v70_v11 }
  0xbf   :  { %v69_v12 = vmul.f32 %v67_v10, %v67_v10 }
  0xc1   :  { %v73_v13 = vsel %vm56_vm0, %v69_v12, 0.0 }
  0xc2   :  { %74 = vadd.xlane.f32.xlu1 %v73_v13 }
 0x14b   :  { %v72_v17 = vpop.xlane.xlu1 %71 }
 0x14c   :  { %v76_v18 = vmul.f32 0.03125, %v72_v17 }
 0x14e   :  { %v78_v19 = vadd.f32 1e-05, %v76_v18 }
 0x14f   :  { %v75_v20 = vpop.xlane.xlu1 %74 }
 0x150   :  { %234 = vrsqrt.f32 %v78_v19  ;;  %v77_v21 = vmul.f32 0.03125, %v75_v20 }
 0x152   :  { %v79_v22 = vadd.f32 1e-05, %v77_v21 }
 0x154   :  { %236 = vrsqrt.f32 %v79_v22 }
 0x15a   :  { %v235_v23 = vpop.eup %234 }
 0x15b   :  { %v82_v24 = vmul.f32 %v235_v23, %v66_v6 }
 0x15d   :  { %v91_v27 = vmul.f32 %v202_v25, %v82_v24 }
 0x15e   :  { %v237_v26 = vpop.eup %236 }
 0x15f   :  { %v83_v28 = vmul.f32 %v237_v26, %v67_v10  ;;  %v100_v31 = vadd.f32 %v203_v29, %v91_v27 }
 0x161   :  { %v92_v30 = vmul.f32 %v202_v25, %v83_v28 }
 0x163   :  { %v101_v32 = vadd.f32 %v203_v29, %v92_v30 }
 0x165   :  { %v102_v33 = vpack.c.bf16 %v101_v32, %v100_v31 }
 0x167   :  { %103 = vst.msk [vmem:[#allocation2] sm:$0xff] %vm56_vm0, %v102_v33 }
 0x16e   :  { %v104_v34 = vld [vmem:[#allocation2] sm:$0xff] }
 0x16f   :  { %220 = vmatmul.mubr.msk.bf16.vlgmr.msra.gmra.mrb[0].mxu0 %vm56_vm0, %v104_v34 }
 0x242   :  { %v166_v36 = vpop.f32.mrb[0].mxu0 }
 0x243   :  { %v167_v37 = vadd.f32 %v204_v35, %v166_v36  ;;  %v221_v38 = vpop.f32.mrb[1].mxu0 }
 0x244   :  { %v169_v39 = vpop.f32.mrb[2].mxu0 }
 0x245   :  { %v210_v40 = vpack.c.bf16 %v167_v37, %v167_v37  ;;  %v170_v41 = vadd.f32 %v204_v35, %v169_v39  ;;  %v222_v42 = vpop.f32.mrb[3].mxu0 }
 0x247   :  { %v211_v43 = vpack.c.bf16 %v170_v41, %v170_v41  ;;  %182 = vst.msk [vmem:[#allocation8] sm:$0xf] %vm181_vm2, %v210_v40 }
 0x249   :  { %183 = vst.msk [vmem:[#allocation8 + $0x4] sm:$0xf] %vm181_vm2, %v211_v43 }
 0x24a   :  { %293 = shalt.err (!%p290_p6)
}
 0x24b   :  { %s294_s27 = scalar_lea.hbm %s411_s5, 128 }
 0x24c   :  { %p295_p7 = scmp.ne.s32.totalorder %s411_s5, %s294_s27  ;;  %p298_p8 = scmp.lt.u32.totalorder %s294_s27, %s411_s5 }
 0x24e   :  { %p300_p9 = pnand %p298_p8, %p295_p7 }
 0x250   :  { %303 = shalt.err (!%p300_p9)
}
 0x251   :  { %195 = dma.vmem_to_hbm [thread:$0]  %s190_s2, 128, %s411_s5, [#allocation5], %s314_s0, %s314_s0, %s315_s17  }
 0x252   :  { %308 = dma.done.wait [#allocation5], 128  }
 0x253   :  { %309 = vsyncadd [#allocation5], 4294967168 }
 0x254   :  { %199 = vsyncpa [#allocation4], 1 }
 0x255   :  { %200 = vsyncpa [#allocation7], 1 }
 0x256   :  { %201 = vsyncpa [#allocation5], 1 }

</bundles_post_ra>
